<compile_context>
chip_gen: v6e
topology: v6e:2x2x1
jax: 0.10.0
libtpu: 0.0.40
codegen_flags: <defaults>
</compile_context>

<pallas_src>
import jax
import jax.numpy as jnp
from jax.experimental import pallas as pl
from jax.experimental.pallas import tpu as pltpu


def _round_up(v, m):
    return ((v + m - 1) // m) * m


def _concat_linear_kernel(x_ref, y_ref, wx_ref, wy_ref, b_ref, out_ref):
    # out = x @ Wx + y @ Wy + b   (the concat is fused away algebraically)
    acc = jnp.dot(x_ref[...], wx_ref[...], preferred_element_type=jnp.float32)
    acc = acc + jnp.dot(y_ref[...], wy_ref[...], preferred_element_type=jnp.float32)
    out_ref[...] = (acc + b_ref[...]).astype(out_ref.dtype)


def _linear_kernel(a_ref, w_ref, b_ref, out_ref):
    acc = jnp.dot(a_ref[...], w_ref[...], preferred_element_type=jnp.float32)
    out_ref[...] = (acc + b_ref[...]).astype(out_ref.dtype)


def _pad_batch(a, b_pad):
    b = a.shape[0]
    if b == b_pad:
        return a
    return jnp.pad(a, ((0, b_pad - b), (0, 0)))


def _batch_tiling(b, block_b):
    tb = min(_round_up(block_b, 8), _round_up(b, 8))
    b_pad = _round_up(b, tb)
    return tb, b_pad


def _tiled_concat_linear(x, y, wx_t, wy_t, b2d, *, block_b):
    b, dx = x.shape
    dy = y.shape[1]
    o_pad = wx_t.shape[1]

    tb, b_pad = _batch_tiling(b, block_b)
    xp = _pad_batch(x, b_pad)
    yp = _pad_batch(y, b_pad)

    cost = pl.CostEstimate(
        flops=2 * b_pad * (dx + dy) * o_pad,
        transcendentals=0,
        bytes_accessed=4 * (b_pad * (dx + dy) + (dx + dy) * o_pad
                            + b_pad * o_pad + o_pad),
    )

    out = pl.pallas_call(
        _concat_linear_kernel,
        out_shape=jax.ShapeDtypeStruct((b_pad, o_pad), jnp.float32),
        grid_spec=pltpu.PrefetchScalarGridSpec(
            num_scalar_prefetch=0,
            grid=(b_pad // tb,),
            in_specs=[
                pl.BlockSpec((tb, dx), lambda i: (i, 0)),
                pl.BlockSpec((tb, dy), lambda i: (i, 0)),
                # weights & bias: constant block index -> resident in VMEM
                # across all batch tiles (no re-fetch per tile).
                pl.BlockSpec((dx, o_pad), lambda i: (0, 0)),
                pl.BlockSpec((dy, o_pad), lambda i: (0, 0)),
                pl.BlockSpec((1, o_pad), lambda i: (0, 0)),
            ],
            out_specs=pl.BlockSpec((tb, o_pad), lambda i: (i, 0)),
        ),
        compiler_params=pltpu.CompilerParams(
            # batch tiles are independent -> megacore sharding on v7x.
            dimension_semantics=("parallel",),
            # NOTE: for production sizes (large D*O resident weight) set
            # vmem_limit_bytes explicitly; on v7x (64 MiB physical VMEM) tile
            # over O or store the weight in bf16 if it does not fit.
        ),
        cost_estimate=cost,
    )(xp, yp, wx_t, wy_t, b2d)
    return out[:b]


def _tiled_linear(a, w_t, b2d, *, block_b):
    b, d = a.shape
    o_pad = w_t.shape[1]

    tb, b_pad = _batch_tiling(b, block_b)
    ap = _pad_batch(a, b_pad)

    cost = pl.CostEstimate(
        flops=2 * b_pad * d * o_pad,
        transcendentals=0,
        bytes_accessed=4 * (b_pad * d + d * o_pad + b_pad * o_pad + o_pad),
    )

    out = pl.pallas_call(
        _linear_kernel,
        out_shape=jax.ShapeDtypeStruct((b_pad, o_pad), jnp.float32),
        grid_spec=pltpu.PrefetchScalarGridSpec(
            num_scalar_prefetch=0,
            grid=(b_pad // tb,),
            in_specs=[
                pl.BlockSpec((tb, d), lambda i: (i, 0)),
                pl.BlockSpec((d, o_pad), lambda i: (0, 0)),
                pl.BlockSpec((1, o_pad), lambda i: (0, 0)),
            ],
            out_specs=pl.BlockSpec((tb, o_pad), lambda i: (i, 0)),
        ),
        compiler_params=pltpu.CompilerParams(
            dimension_semantics=("parallel",),
        ),
        cost_estimate=cost,
    )(ap, w_t, b2d)
    return out[:b]


def prepare_concat_fusion_params(weight, bias, d_x):
    """One-time parameter prep (hoisted out of the per-call path).

    weight: (O, Dx+Dy) as in nn.Linear; bias: (O,).
    Returns pre-transposed, O-padded (lane-dense) weight halves and 2-D bias.
    """
    o = weight.shape[0]
    o_pad = _round_up(o, 128)
    w_pad = jnp.pad(weight, ((0, o_pad - o), (0, 0)))   # (O_pad, Dx+Dy)
    b_pad = jnp.pad(bias, ((0, o_pad - o),))
    wx_t = w_pad[:, :d_x].T                             # (Dx, O_pad)
    wy_t = w_pad[:, d_x:].T                             # (Dy, O_pad)
    return {"wx_t": wx_t, "wy_t": wy_t, "b2d": b_pad.reshape(1, o_pad),
            "out_dim": o}


def concat_fusion_forward(x, y, params, mode=0, *, block_b=256):
    """Pallas ConcatFusion.forward. mode=0 -> output; mode=1 -> (x_out, y_out)."""
    wx_t, wy_t, b2d = params["wx_t"], params["wy_t"], params["b2d"]
    o = params["out_dim"]
    if mode == 0:
        out = _tiled_concat_linear(x, y, wx_t, wy_t, b2d, block_b=block_b)
        return out[:, :o]
    x_out = _tiled_linear(x, wx_t, b2d, block_b=block_b)[:, :o]
    y_out = _tiled_linear(y, wy_t, b2d, block_b=block_b)[:, :o]
    return x_out, y_out


def concat_fusion_reference(x, y, weight, bias, mode=0):
    feature = jnp.concatenate([x, y], axis=1)
    if mode == 0:
        return feature @ weight.T + bias
    fx = jnp.concatenate([x, jnp.zeros_like(y)], axis=1)
    fy = jnp.concatenate([jnp.zeros_like(x), y], axis=1)
    return fx @ weight.T + bias, fy @ weight.T + bias


if __name__ == "__main__":
    # small shapes consistent with the module: fc_out = Linear(DX+DY, O)
    B, DX, DY, O = 16, 64, 64, 100
    BLOCK_B = 8   # small batch tile so the test exercises multiple grid steps

    key = jax.random.PRNGKey(0)
    kx, ky, kw, kb = jax.random.split(key, 4)
    x = jax.random.normal(kx, (B, DX), dtype=jnp.float32)
    y = jax.random.normal(ky, (B, DY), dtype=jnp.float32)
    weight = jax.random.normal(kw, (O, DX + DY), dtype=jnp.float32) / jnp.sqrt(DX + DY)
    bias = jax.random.normal(kb, (O,), dtype=jnp.float32) * 0.01

    params = prepare_concat_fusion_params(weight, bias, DX)

    # mode=0 (default forward)
    out = concat_fusion_forward(x, y, params, mode=0, block_b=BLOCK_B)
    jax.block_until_ready(out)
    out_ref = concat_fusion_reference(x, y, weight, bias, mode=0)
    assert out.shape == (B, O)
    assert jnp.allclose(out, out_ref, atol=1e-4, rtol=1e-4), "mode=0 mismatch"

    # mode=1
    x_out, y_out = concat_fusion_forward(x, y, params, mode=1, block_b=BLOCK_B)
    jax.block_until_ready((x_out, y_out))
    x_ref, y_ref = concat_fusion_reference(x, y, weight, bias, mode=1)
    assert jnp.allclose(x_out, x_ref, atol=1e-4, rtol=1e-4), "mode=1 x mismatch"
    assert jnp.allclose(y_out, y_ref, atol=1e-4, rtol=1e-4), "mode=1 y mismatch"

    print("KERNEL_OK")
</pallas_src>

<mosaic_0001>
module attributes {stable_mosaic.version = 11 : i64} {
  func.func @_concat_linear_kernel(%arg0: i32, %arg1: memref<8x64xf32, #tpu.memory_space<vmem>>, %arg2: memref<8x64xf32, #tpu.memory_space<vmem>>, %arg3: memref<64x128xf32, #tpu.memory_space<vmem>>, %arg4: memref<64x128xf32, #tpu.memory_space<vmem>>, %arg5: memref<1x128xf32, #tpu.memory_space<vmem>>, %arg6: memref<8x128xf32, #tpu.memory_space<vmem>>) attributes {dimension_semantics = [#tpu.dimension_semantics<parallel>], iteration_bounds = array<i64: 2>, scalar_prefetch = 0 : i64, scratch_operands = 0 : i64, tpu.core_type = #tpu.core_type<tc>, window_params = [{transform_indices = @transform_0, window_bounds = array<i64: 8, 64>}, {transform_indices = @transform_1, window_bounds = array<i64: 8, 64>}, {pipeline_mode = #tpu.pipeline_mode<synchronous>, transform_indices = @transform_2, window_bounds = array<i64: 64, 128>}, {pipeline_mode = #tpu.pipeline_mode<synchronous>, transform_indices = @transform_3, window_bounds = array<i64: 64, 128>}, {pipeline_mode = #tpu.pipeline_mode<synchronous>, transform_indices = @transform_4, window_bounds = array<i64: 1, 128>}, {transform_indices = @transform_5, window_bounds = array<i64: 8, 128>}]} {
    %c0 = arith.constant 0 : index
    %c0_0 = arith.constant 0 : index
    %0 = vector.load %arg1[%c0, %c0_0] : memref<8x64xf32, #tpu.memory_space<vmem>>, vector<8x64xf32>
    %c0_1 = arith.constant 0 : index
    %c0_2 = arith.constant 0 : index
    %1 = vector.load %arg3[%c0_1, %c0_2] : memref<64x128xf32, #tpu.memory_space<vmem>>, vector<64x128xf32>
    %cst = arith.constant dense<0.000000e+00> : vector<8x128xf32>
    %2 = tpu.matmul %0, %1, %cst {dimension_numbers = #tpu.dot_dimension_numbers<[1], [0], [0], [1], [0, 0, 1, 1], [], []>} : vector<8x64xf32>, vector<64x128xf32>, vector<8x128xf32> -> vector<8x128xf32>
    %c0_3 = arith.constant 0 : index
    %c0_4 = arith.constant 0 : index
    %3 = vector.load %arg2[%c0_3, %c0_4] : memref<8x64xf32, #tpu.memory_space<vmem>>, vector<8x64xf32>
    %c0_5 = arith.constant 0 : index
    %c0_6 = arith.constant 0 : index
    %4 = vector.load %arg4[%c0_5, %c0_6] : memref<64x128xf32, #tpu.memory_space<vmem>>, vector<64x128xf32>
    %cst_7 = arith.constant dense<0.000000e+00> : vector<8x128xf32>
    %5 = tpu.matmul %3, %4, %cst_7 {dimension_numbers = #tpu.dot_dimension_numbers<[1], [0], [0], [1], [0, 0, 1, 1], [], []>} : vector<8x64xf32>, vector<64x128xf32>, vector<8x128xf32> -> vector<8x128xf32>
    %6 = arith.addf %2, %5 : vector<8x128xf32>
    %c0_8 = arith.constant 0 : index
    %c0_9 = arith.constant 0 : index
    %7 = vector.load %arg5[%c0_8, %c0_9] : memref<1x128xf32, #tpu.memory_space<vmem>>, vector<1x128xf32>
    %8 = vector.broadcast %7 : vector<1x128xf32> to vector<8x128xf32>
    %9 = arith.addf %6, %8 : vector<8x128xf32>
    %c0_10 = arith.constant 0 : index
    %c0_11 = arith.constant 0 : index
    %10 = vector.load %arg6[%c0_10, %c0_11] : memref<8x128xf32, #tpu.memory_space<vmem>>, vector<8x128xf32>
    tpu.vector_store %arg6[%c0_10, %c0_11], %9 {strides = array<i32>} : memref<8x128xf32, #tpu.memory_space<vmem>>, vector<8x128xf32>,
    return
  }
  func.func @transform_0(%arg0: i32) -> (i32, i32) {
    %c0_i32 = arith.constant 0 : i32
    %c0_i32_0 = arith.constant 0 : i32
    return %arg0, %c0_i32 : i32, i32
  }
  func.func @transform_1(%arg0: i32) -> (i32, i32) {
    %c0_i32 = arith.constant 0 : i32
    %c0_i32_0 = arith.constant 0 : i32
    return %arg0, %c0_i32 : i32, i32
  }
  func.func @transform_2(%arg0: i32) -> (i32, i32) {
    %c0_i32 = arith.constant 0 : i32
    %c0_i32_0 = arith.constant 0 : i32
    %c0_i32_1 = arith.constant 0 : i32
    return %c0_i32, %c0_i32_0 : i32, i32
  }
  func.func @transform_3(%arg0: i32) -> (i32, i32) {
    %c0_i32 = arith.constant 0 : i32
    %c0_i32_0 = arith.constant 0 : i32
    %c0_i32_1 = arith.constant 0 : i32
    return %c0_i32, %c0_i32_0 : i32, i32
  }
  func.func @transform_4(%arg0: i32) -> (i32, i32) {
    %c0_i32 = arith.constant 0 : i32
    %c0_i32_0 = arith.constant 0 : i32
    %c0_i32_1 = arith.constant 0 : i32
    return %c0_i32, %c0_i32_0 : i32, i32
  }
  func.func @transform_5(%arg0: i32) -> (i32, i32) {
    %c0_i32 = arith.constant 0 : i32
    %c0_i32_0 = arith.constant 0 : i32
    return %arg0, %c0_i32 : i32, i32
  }
}

</mosaic_0001>

<bundles_post_ra>
// kernel: tpu_custom_call.1
= control target key start
LH: loop header
LB: loop body
LE: loop exit
PB: predicated region body
PF: predicated region fallthrough
CT: control target
= control target key end

     0   :  { %s1213_s0 = inlined_call_operand.hbm [shape: f32[16,64], index: 0, kind: input, shape index: {}]   ;;  %s1214_s1 = inlined_call_operand.hbm [shape: f32[16,64], index: 1, kind: input, shape index: {}]   ;;  %s1215_s2 = inlined_call_operand.hbm [shape: f32[64,128], index: 2, kind: input, shape index: {}]   ;;  %s1216_s3 = inlined_call_operand.hbm [shape: f32[64,128], index: 3, kind: input, shape index: {}]   ;;  %s1217_s4 = inlined_call_operand.vmem [shape: f32[1,128], index: 4, kind: input, shape index: {}]   ;;  %s1218_s5 = inlined_call_operand.hbm [shape: f32[16,128], index: 5, kind: output, shape index: {}]  }
   0x1   :  { %1223 = sst [smem:[#allocation16_spill]] %s1215_s2 }
   0x2   :  { %1224 = sst [smem:[#allocation17_spill]] %s1216_s3 }
   0x3   :  { %10 = vsyncpa [#allocation3], 0 }
   0x4   :  { %12 = vsyncpa [#allocation3 + $0x1], 0 }
   0x5   :  { %13 = vsyncpa [#allocation6], 0 }
   0x6   :  { %15 = vsyncpa [#allocation6 + $0x1], 0 }
   0x7   :  { %16 = vsyncpa [#allocation9], 0 }
   0x8   :  { %17 = vsyncpa [#allocation4], 0 }
   0x9   :  { %19 = vsyncpa [#allocation4 + $0x1], 0  ;;  %s985_s18 = smov 0   ;;  %s987_s19 = smov 0  }
   0xa   :  { %s989_s20 = smov 0   ;;  %s991_s21 = smov 0  }
   0xb LB: > { %s1006_s22 = sadd.s32 4294967295, %s944_s21   ;;  %s606_s23 = sadd.s32 4294967294, %s944_s21   ;;  %s944_s21 = sphi %s991_s21, %s1246_s21   ;;  %s940_s20 = sphi %s989_s20, %s1245_s20   ;;  %s936_s19 = sphi %s987_s19, %s1244_s19   ;;  %s932_s18 = sphi %s985_s18, %s1243_s18  }
   0xc   : > { %p45_p0 = scmp.ne.s32.totalorder %s936_s19, %s932_s18  ;;  %p1219_p1 = scmp.eq.s32.totalorder %s1006_s22, 0 }
   0xd   : > { %p164_p3 = scmp.eq.s32.totalorder %s606_s23, 1  ;;  %p607_p5 = scmp.ge.s32.totalorder %s944_s21, 1 }
   0xe   : > { %p1015_p4 = por %p1219_p1, %p45_p0  ;;  %p171_p7 = scmp.lt.s32.totalorder %s944_s21, 3 }
   0xf   : > { %p1020_p6 = por %p164_p3, %p45_p0  ;;  %s946_s27 = smov [#allocation7]  }
  0x10   : > { %s1225_s24 = scalar_select %p1015_p4, 1, 0 }
  0x11   : > { %s1226_s25 = scalar_select %p1020_p6, 1, 0 }
  0x12   : > { %p1025_p8 = pnand %p607_p5, %p171_p7  ;;  %s183_s28 = sshll.u32 %s946_s27, 4  ;;  %s184_s28 = int_to_ptr.vmem [resolvable:$true] %s183_s28 }
  0x13   : > { %s947_s30 = smov [#allocation8]   ;;  %s771_s7 = scalar_lea.vmem %s184_s28, 1024 }
  0x14   : > { %s1227_s26 = scalar_select %p1025_p8, 1, 0 }
  0x15   : > { %p698_p9 = pneg %p1025_p8  ;;  %s196_s6 = sshll.u32 %s947_s30, 4  ;;  %s197_s6 = int_to_ptr.vmem [resolvable:$true] %s196_s6 }
  0x16   : > { %p772_p13 = scmp.ne.s32.totalorder %s184_s28, %s771_s7  ;;  %p779_p5 = scmp.lt.s32.totalorder %s184_s28, %s184_s28 }
  0x17   : > { %p1034_p11 = pnand %p698_p9, %p1219_p1  ;;  %p780_p7 = scmp.lt.s32.totalorder %s771_s7, %s771_s7 }
  0x19   : > { %p762_p12 = pneg %p1034_p11  ;;  %p781_p10 = por %p780_p7, %p779_p5 }
  0x1b   : > { %p774_p0 = pnand %p772_p13, %p762_p12 }
  0x1d   : > { %p775_p3 = pneg %p774_p0 }
  0x1f   : > { %p782_p9 = pnand %p781_p10, %p775_p3 }
  0x21   : > { %785 = shalt.err (!%p782_p9)
}
  0x22   : > { %s948_s8 = smov 128   ;;  %s949_s9 = smov 8  }
  0x23   : > { %s1229_s2 = sld [smem:[#allocation16_spill]]  ;;  %s797_s12 = scalar_lea.vmem %s197_s6, 1024 }
  0x24   : > { %p798_p1 = scmp.ne.s32.totalorder %s197_s6, %s797_s12  ;;  %p805_p2 = scmp.lt.s32.totalorder %s197_s6, %s197_s6 }
  0x25   : > { %p806_p6 = scmp.lt.s32.totalorder %s797_s12, %s797_s12 }
  0x26   : > { %p800_p13 = pnand %p798_p1, %p762_p12 }
  0x27   : > { %p807_p5 = por %p806_p6, %p805_p2 }
  0x28   : > { %p801_p0 = pneg %p800_p13 }
  0x29   : > { %701 = dma.hbm_to_vmem [thread:$0]  (!%p1034_p11), %s1229_s2, 1024, %s184_s28, [#allocation6], %s948_s8, %s948_s8, %s949_s9  }
  0x2a   : > { %p808_p10 = pnand %p807_p5, %p801_p0 }
  0x2c   : > { %811 = shalt.err (!%p808_p10)
}
  0x2d   : > { %s1230_s3 = sld [smem:[#allocation17_spill]]  ;;  %s1057_s15 = sadd.s32 1, %s944_s21  }
  0x2e   : > { %s32_s16 = sadd.s32 1, %s940_s20  ;;  %s29_s17 = ssub.s32 %s944_s21, %s1057_s15 }
  0x2f   : > { %p39_p1 = scmp.ne.s32.totalorder %s940_s20, %s936_s19  ;;  %p30_p2 = scmp.eq.s32.totalorder %s29_s17, 0 }
  0x30   : > { %p40_p6 = scmp.eq.s32.totalorder %s944_s21, 0  ;;  %p1231_p12 = scmp.eq.s32.totalorder %s1006_s22, 1 }
  0x31   : > { %p718_p7 = scmp.lt.s32.totalorder %s944_s21, 2  ;;  %s213_s28 = sand.u32 1, %s940_s20  }
  0x32   : > { %p1067_p3 = por %p1231_p12, %p39_p1  ;;  %p41_p9 = por %p40_p6, %p39_p1 }
  0x33   : > { %704 = dma.hbm_to_vmem [thread:$0]  (!%p1034_p11), %s1230_s3, 1024, %s197_s6, [#allocation9], %s948_s8, %s948_s8, %s949_s9  }
  0x34   : > { %s1232_s23 = scalar_select %p1067_p3, 1, 0 }
  0x35   : > { %s1073_s27 = scalar_select %p30_p2, %s940_s20, %s32_s16  }
  0x36   : > { %s1076_s29 = sshll.u32 %s213_s28, 3  ;;  %s612_s30 = sshll.u32 %s944_s21, 7 }
  0x37   : > { %s1082_s8 = scalar_lea.hbm %s1213_s0, %s612_s30  ;;  %s217_s9 = scalar_lea.vmem [#allocation2], %s1076_s29 }
  0x38   : > { %s224_s10 = sshll.u32 %s217_s9, 4  ;;  %p1087_p11 = pnand %p718_p7, %p41_p9  ;;  %s1085_s10 = int_to_ptr.vmem [resolvable:$true] %s224_s10 }
  0x39   : > { %s1094_s14 = scalar_lea.hbm %s1214_s1, %s612_s30  ;;  %s231_s16 = sand.u32 1, %s944_s21  }
  0x3a   : > { %s214_s17 = scalar_lea.sflag [#allocation3], %s213_s28  ;;  %s812_s6 = scalar_lea.hbm %s1082_s8, 128 }
  0x3b   : > { %p813_p13 = scmp.ne.s32.totalorder %s1082_s8, %s812_s6  ;;  %p814_p0 = pneg %p1087_p11 }
  0x3c   : > { %s817_s2 = scalar_lea.hbm %s1213_s0, 256  ;;  %p818_p1 = scmp.lt.s32.totalorder %s1082_s8, %s1213_s0 }
  0x3d   : > { %p815_p5 = pnand %p814_p0, %p813_p13  ;;  %p819_p2 = scmp.lt.s32.totalorder %s817_s2, %s812_s6 }
  0x3f   : > { %p816_p10 = pneg %p815_p5  ;;  %p820_p6 = por %p819_p2, %p818_p1 }
  0x41   : > { %p821_p12 = pnand %p820_p6, %p816_p10 }
  0x43   : > { %824 = shalt.err (!%p821_p12)
}
  0x44   : > { %s825_s28 = scalar_lea.vmem %s1085_s10, 128  ;;  %s950_s30 = smov [#allocation2]  }
  0x45   : > { %p826_p7 = scmp.ne.s32.totalorder %s1085_s10, %s825_s28  ;;  %s830_s13 = sshll.u32 %s950_s30, 4  ;;  %s831_s13 = int_to_ptr.vmem [resolvable:$false] %s830_s13 }
  0x46   : > { %s832_s7 = scalar_lea.vmem %s831_s13, 256  ;;  %p833_p5 = scmp.lt.s32.totalorder %s1085_s10, %s831_s13 }
  0x47   : > { %p828_p9 = pnand %p826_p7, %p814_p0  ;;  %p834_p3 = scmp.lt.s32.totalorder %s832_s7, %s825_s28 }
  0x49   : > { %p829_p13 = pneg %p828_p9  ;;  %p835_p4 = por %p834_p3, %p833_p5 }
  0x4b   : > { %p836_p1 = pnand %p835_p4, %p829_p13 }
  0x4d   : > { %839 = shalt.err (!%p836_p1)
}
  0x4e   : > { %708 = dma.hbm_to_vmem [thread:$0]  (!%p1087_p11), %s1082_s8, 128, %s1085_s10, %s214_s17  }
  0x4f   : > { %s235_s2 = scalar_lea.vmem [#allocation5], %s1076_s29  ;;  %s232_s6 = scalar_lea.sflag [#allocation6], %s231_s16 }
  0x50   : > { %s242_s3 = sshll.u32 %s235_s2, 4  ;;  %s840_s9 = scalar_lea.hbm %s1094_s14, 128  ;;  %s243_s3 = int_to_ptr.vmem [resolvable:$true] %s242_s3 }
  0x51   : > { %p841_p3 = scmp.ne.s32.totalorder %s1094_s14, %s840_s9  ;;  %s845_s30 = scalar_lea.hbm %s1214_s1, 256 }
  0x52   : > { %p846_p2 = scmp.lt.s32.totalorder %s1094_s14, %s1214_s1  ;;  %p847_p6 = scmp.lt.s32.totalorder %s845_s30, %s840_s9 }
  0x53   : > { %p843_p4 = pnand %p841_p3, %p814_p0 }
  0x54   : > { %p848_p12 = por %p847_p6, %p846_p2 }
  0x55   : > { %p844_p10 = pneg %p843_p4 }
  0x57   : > { %p849_p7 = pnand %p848_p12, %p844_p10 }
  0x59   : > { %852 = shalt.err (!%p849_p7)
}
  0x5a   : > { %s853_s29 = scalar_lea.vmem %s243_s3, 128  ;;  %s951_s8 = smov [#allocation5]  }
  0x5b   : > { %p854_p9 = scmp.ne.s32.totalorder %s243_s3, %s853_s29  ;;  %s858_s10 = sshll.u32 %s951_s8, 4  ;;  %s859_s10 = int_to_ptr.vmem [resolvable:$false] %s858_s10 }
  0x5c   : > { %s860_s16 = scalar_lea.vmem %s859_s10, 256  ;;  %p861_p1 = scmp.lt.s32.totalorder %s243_s3, %s859_s10 }
  0x5d   : > { %p856_p13 = pnand %p854_p9, %p814_p0  ;;  %p862_p3 = scmp.lt.s32.totalorder %s860_s16, %s853_s29 }
  0x5f   : > { %p857_p5 = pneg %p856_p13  ;;  %p863_p4 = por %p862_p3, %p861_p1 }
  0x61   : > { %p864_p8 = pnand %p863_p4, %p857_p5 }
  0x63   : > { %867 = shalt.err (!%p864_p8)
}
  0x64   : > { %711 = dma.hbm_to_vmem [thread:$0]  (!%p1087_p11), %s1094_s14, 128, %s243_s3, %s232_s6  }
  0x65   : > { %p1234_p10 = scmp.ne.s32.totalorder %s1227_s26, 0 }
  0x66   : > { %s1145_s17 = sand.u32 (!%p1234_p10), 1, %s936_s19   ;;  %p1235_p0 = scmp.ne.s32.totalorder (!%p1234_p10), %s1225_s24, 0 }
  0x67   : > { %251 = sbr.rel (%p1234_p10) target bundleno = 346 (0x15a), region = 40  ;;  %s1148_s2 = sshll.u32 (!%p1234_p10), %s1145_s17, 3 }
  0x68   : > { %s254_s9 = scalar_lea.sflag (!%p1234_p10), [#allocation3], %s1145_s17  ;;  %s257_s12 = scalar_lea.vmem (!%p1234_p10), [#allocation2], %s1148_s2 }
  0x6c   : > { %911 = dma.done.wait (%p1235_p0), %s254_s9, 128  }
  0x6d   : > { %913 = vsyncadd (%p1235_p0), %s254_s9, 4294967168  ;;  %s262_s26 = sand.u32 1, %s1006_s22   ;;  %s266_s14 = scalar_lea.vmem [#allocation5], %s1148_s2 }
  0x6e   : > { %s263_s11 = scalar_lea.sflag [#allocation6], %s262_s26 }
  0x6f   : > { %915 = dma.done.wait (%p1235_p0), %s263_s11, 128  }
  0x70   : > { %917 = vsyncadd (%p1235_p0), %s263_s11, 4294967168  ;;  %p1236_p8 = scmp.eq.s32.totalorder %s1006_s22, 0 }
  0x72   : > { %919 = dma.done.wait (%p1236_p8), [#allocation6], 1024   ;;  %p1237_p11 = pmov %p1236_p8 }
  0x73   : > { %p1238_p2 = pmov %p1236_p8 }
  0x74   : > { %921 = vsyncadd (%p1237_p11), [#allocation6], 4294966272 }
  0x75   : > { %923 = dma.done.wait (%p1238_p2), [#allocation9], 1024   ;;  %p1239_p6 = pmov %p1238_p2 }
  0x76   : > { %v952_v0 = vmov 0.0   ;;  %vm953_vm0 = vmmov 0   ;;  %v323_v1 = vld [vmem:[#allocation8 + $0x38] sm:$0xff]  ;;  %v322_v3 = vld [vmem:[#allocation8 + $0x30] sm:$0xff]  ;;  %v321_v5 = vld [vmem:[#allocation8 + $0x28] sm:$0xff]  ;;  %vm324_vm1 = vcmask 523264  }
  0x77   : > { %925 = vsyncadd (%p1239_p6), [#allocation9], 4294966272  ;;  %646 = vmatprep.subr.mxu0 %v952_v0  ;;  %665 = vmatprep.subr.mxu1 %v952_v0  ;;  %v314_v2 = vld [vmem:[#allocation7 + $0x38] sm:$0xff]  ;;  %v313_v4 = vld [vmem:[#allocation7 + $0x30] sm:$0xff]  ;;  %s625_s6 = sshll.u32 %s1006_s22, 7  ;;  %s305_s28 = scalar_lea.vmem [#allocation10], %s1148_s2 }
  0x78   : > { %662 = vmatprep.mubr.msk.f32.mxu0 %vm953_vm0, %v952_v0  ;;  %681 = vmatprep.mubr.msk.f32.mxu1 %vm953_vm0, %v952_v0  ;;  %v312_v6 = vld [vmem:[#allocation7 + $0x28] sm:$0xff]  ;;  %v320_v7 = vld [vmem:[#allocation8 + $0x20] sm:$0xff]  ;;  %v319_v9 = vld [vmem:[#allocation8 + $0x18] sm:$0xff]  ;;  %s494_s30 = sshll.u32 %s305_s28, 4  ;;  %s492_s29 = scalar_lea.hbm %s1218_s5, %s625_s6  ;;  %s495_s30 = int_to_ptr.vmem [resolvable:$true] %s494_s30 }
  0x79   : > { %647 = vmatpush3.msra.mxu0 %v323_v1  ;;  %666 = vmatpush3.msra.mxu1 %v314_v2  ;;  %v311_v8 = vld [vmem:[#allocation7 + $0x20] sm:$0xff]  ;;  %v310_v10 = vld [vmem:[#allocation7 + $0x18] sm:$0xff]  ;;  %v318_v11 = vld [vmem:[#allocation8 + $0x10] sm:$0xff]  ;;  %s481_s8 = scalar_lea.sflag [#allocation4], %s1145_s17  ;;  %s868_s10 = scalar_lea.vmem %s495_s30, 128 }
  0x7a   : > { %648 = vmatprep.subr.mxu0 %v952_v0  ;;  %667 = vmatprep.subr.mxu1 %v952_v0  ;;  %v309_v12 = vld [vmem:[#allocation7 + $0x10] sm:$0xff]  ;;  %v317_v13 = vld [vmem:[#allocation8 + $0x8] sm:$0xff]  ;;  %v316_v15 = vld [vmem:[#allocation8] sm:$0xff]  ;;  %p869_p12 = scmp.ne.s32.totalorder %s495_s30, %s868_s10  ;;  %p1240_p7 = scmp.ne.s32.totalorder %s1232_s23, 0 }
  0x7b   : > { %649 = vmatpush3.msra.mxu0 %v322_v3  ;;  %668 = vmatpush3.msra.mxu1 %v313_v4  ;;  %v308_v14 = vld [vmem:[#allocation7 + $0x8] sm:$0xff]  ;;  %v307_v16 = vld [vmem:[#allocation7] sm:$0xff]  ;;  %v315_v17 = vld [vmem:[%s266_s14] sm:$0xff]  ;;  %s954_s16 = smov [#allocation10]  }
  0x7c   : > { %650 = vmatprep.subr.mxu0 %v952_v0  ;;  %669 = vmatprep.subr.mxu1 %v952_v0  ;;  %v306_v18 = vld [vmem:[%s257_s12] sm:$0xff]  ;;  %p870_p9 = pnand %p869_p12, %p1240_p7  ;;  %s872_s22 = sshll.u32 %s954_s16, 4  ;;  %s873_s22 = int_to_ptr.vmem [resolvable:$false] %s872_s22 }
  0x7d   : > { %651 = vmatpush3.msra.mxu0 %v321_v5  ;;  %670 = vmatpush3.msra.mxu1 %v312_v6  ;;  %v623_v21 = vld [vmem:[%s1217_s4] ss:$0 sm:$0xff]  ;;  %s874_s2 = scalar_lea.vmem %s873_s22, 256  ;;  %p875_p5 = scmp.lt.s32.totalorder %s495_s30, %s873_s22 }
  0x7e   : > { %652 = vmatprep.subr.mxu0 %v952_v0  ;;  %671 = vmatprep.subr.mxu1 %v952_v0  ;;  %p871_p13 = pneg %p870_p9  ;;  %p876_p1 = scmp.lt.s32.totalorder %s874_s2, %s868_s10 }
  0x7f   : > { %653 = vmatpush3.msra.mxu0 %v320_v7  ;;  %672 = vmatpush3.msra.mxu1 %v311_v8 }
  0x80   : > { %654 = vmatprep.subr.mxu0 %v952_v0  ;;  %673 = vmatprep.subr.mxu1 %v952_v0  ;;  %p877_p3 = por %p876_p1, %p875_p5 }
  0x81   : > { %655 = vmatpush3.msra.mxu0 %v319_v9  ;;  %674 = vmatpush3.msra.mxu1 %v310_v10 }
  0x82   : > { %656 = vmatprep.subr.mxu0 %v952_v0  ;;  %675 = vmatprep.subr.mxu1 %v952_v0  ;;  %p878_p4 = pnand %p877_p3, %p871_p13 }
  0x83   : > { %657 = vmatpush3.msra.mxu0 %v318_v11  ;;  %676 = vmatpush3.msra.mxu1 %v309_v12 }
  0x84   : > { %658 = vmatprep.subr.mxu0 %v952_v0  ;;  %677 = vmatprep.subr.mxu1 %v952_v0 }
  0x85   : > { %659 = vmatpush3.msra.mxu0 %v317_v13  ;;  %678 = vmatpush3.msra.mxu1 %v308_v14 }
  0x86   : > { %660 = vmatprep.subr.mxu0 %v952_v0  ;;  %679 = vmatprep.subr.mxu1 %v952_v0 }
  0x87   : > { %661 = vmatpush3.msra.mxu0 %v316_v15  ;;  %680 = vmatpush3.msra.mxu1 %v307_v16 }
  0x88   : > { %663 = vmatmul.mubr.msk.f32.vlgmr.msra.gmra.mxu0 %vm324_vm1, %v315_v17  ;;  %682 = vmatmul.mubr.msk.f32.vlgmr.msra.gmra.mxu1 %vm324_vm1, %v306_v18 }
 0x148   : > { %v394_v19 = vpop.f32.mrf.mxu0  ;;  %v467_v20 = vpop.f32.mrf.mxu1 }
 0x149   : > { %v468_v22 = vadd.f32 %v467_v20, %v394_v19 }
 0x14a   : > { %v664_v23 = vpop.f32.mrf.mxu0  ;;  %v683_v24 = vpop.f32.mrf.mxu1 }
 0x14b   : > { %v478_v25 = vadd.f32 %v623_v21, %v468_v22 }
 0x14d   : > { %479 = vst [vmem:[%s305_s28] sm:$0xff] %v478_v25 }
 0x14e   : > { %881 = shalt.err (!%p878_p4)
}
 0x14f   : > { %s882_s9 = scalar_lea.hbm %s492_s29, 128  ;;  %s886_s26 = scalar_lea.hbm %s1218_s5, 256 }
 0x150   : > { %p883_p10 = scmp.ne.s32.totalorder %s492_s29, %s882_s9  ;;  %p887_p11 = scmp.lt.s32.totalorder %s492_s29, %s1218_s5 }
 0x151   : > { %p888_p2 = scmp.lt.s32.totalorder %s886_s26, %s882_s9 }
 0x152   : > { %p884_p0 = pnand %p883_p10, %p1240_p7 }
 0x153   : > { %p889_p6 = por %p888_p2, %p887_p11 }
 0x154   : > { %p885_p8 = pneg %p884_p0 }
 0x156   : > { %p890_p12 = pnand %p889_p6, %p885_p8 }
 0x158   : > { %893 = shalt.err (!%p890_p12)
}
 0x159   : > { %696 = dma.vmem_to_hbm [thread:$0]  (%p1240_p7), %s495_s30, 128, %s492_s29, %s481_s8  }
 0x15a PF: > { %s506_s24 = sand.u32 1, %s932_s18   ;;  %p1241_p9 = scmp.ne.s32.totalorder %s1226_s25, 0 }
 0x15b   : > { %p1242_p13 = scmp.ge.s32.totalorder %s944_s21, 2  ;;  %s507_s3 = scalar_lea.sflag [#allocation4], %s506_s24 }
 0x15d   : > { %p713_p5 = pnand %p1242_p13, %p1241_p9 }
 0x15f   : > { %p714_p1 = pneg %p713_p5 }
 0x161   : > { %927 = dma.done.wait (%p714_p1), %s507_s3, 128  }
 0x162   : > { %929 = vsyncadd (%p714_p1), %s507_s3, 4294967168  ;;  %p22_p3 = scmp.ge.s32.totalorder %s1057_s15, 4   ;;  %s1243_s18 = smov %s936_s19 }
 0x163   : > { %s1244_s19 = smov %s940_s20  ;;  %s1245_s20 = smov %s1073_s27 }
 0x164   : > { %s1246_s21 = smov %s1057_s15  ;;  %24 = sbr.rel (!%p22_p3) target bundleno = 11 (0xb), region = 106 }
 0x169   :  { %512 = vsyncpa [#allocation3], 1 }
 0x16a   :  { %514 = vsyncpa [#allocation3 + $0x1], 1 }
 0x16b   :  { %515 = vsyncpa [#allocation6], 1 }
 0x16c   :  { %517 = vsyncpa [#allocation6 + $0x1], 1 }
 0x16d   :  { %518 = vsyncpa [#allocation9], 1 }
 0x16e   :  { %519 = vsyncpa [#allocation4], 1 }
 0x16f   :  { %521 = vsyncpa [#allocation4 + $0x1], 1 }

</bundles_post_ra>
